<compile_context>
chip_gen: v6e
topology: v6e:2x2x1
jax: 0.10.0
libtpu: 0.0.40
codegen_flags: <defaults>
</compile_context>

<pallas_src>
import jax
import jax.numpy as jnp
from jax.experimental import pallas as pl
from jax.experimental.pallas import tpu as pltpu


def _se_kernel(x_ref, w1t_ref, b1_ref, w2t_ref, b2_ref, o_ref):
    # x_ref block: (Nb, C, HW) — channels on sublanes, flattened spatial on lanes.

    # AdaptiveAvgPool2d(1): spatial mean per (batch, channel), accumulated in
    # f32 without materializing a full f32 copy of the big tile.
    pooled = jnp.mean(x_ref[...], axis=-1, dtype=jnp.float32)          # (Nb, C)

    # Conv2d(C, mid, 1) on the pooled tensor == (Nb, C) @ (C, mid) + bias.
    h = jnp.dot(pooled, w1t_ref[...],
                preferred_element_type=jnp.float32) + b1_ref[...]      # (Nb, mid)
    h = jnp.maximum(h, 0.0)                                            # ReLU

    # Conv2d(mid, C, 1) == (Nb, mid) @ (mid, C) + bias.
    s = jnp.dot(h, w2t_ref[...],
                preferred_element_type=jnp.float32) + b2_ref[...]      # (Nb, C)
    s = 1.0 / (1.0 + jnp.exp(-s))                                      # Sigmoid

    # Scale in the input dtype; broadcast the per-channel gate over the
    # spatial (lane) axis.
    o_ref[...] = x_ref[...] * s.astype(o_ref.dtype)[:, :, None]


def _choose_block_batch(n, per_elem_bytes):
    """How many batch elements to process per grid step.

    - keeps 2x double-buffered (x tile + out tile) under ~32 MiB (v7x-safe),
    - targets >= ~2 MiB input tiles for HBM-bandwidth efficiency,
    - only returns divisors of n (no ragged tail / padded rows),
    - prefers >= 2 grid steps so both v7x TensorCores stay busy.
    """
    pipeline_budget = 32 * 1024 * 1024                # 2 bufs x (x + out) tiles
    cap = max(1, pipeline_budget // (4 * per_elem_bytes))
    target = max(1, -(-(2 * 1024 * 1024) // per_elem_bytes))  # ceil(2 MiB / elem)
    want = min(cap, target)
    divisors = [d for d in range(1, n + 1) if n % d == 0 and d <= want]
    for d in reversed(divisors):
        if n // d >= 2:
            return d
    return divisors[-1]


def se_layer(x_nchw, w1, b1, w2, b2):
    """x_nchw: (N, C, H, W); w1: (mid, C); b1: (mid,); w2: (C, mid); b2: (C,)."""
    N, C, H, W = x_nchw.shape
    mid = w1.shape[0]
    HW = H * W

    nb = _choose_block_batch(N, C * HW * x_nchw.dtype.itemsize)
    grid = N // nb

    x_flat = x_nchw.reshape(N, C, HW)
    # Pre-transpose the tiny 1x1-conv weights so the in-kernel dots are plain
    # row-major (Nb, C) @ (C, mid) / (Nb, mid) @ (mid, C) matmuls.
    w1t = w1.T.astype(jnp.float32)                    # (C, mid)
    w2t = w2.T.astype(jnp.float32)                    # (mid, C)
    b1_2d = b1.reshape(1, mid).astype(jnp.float32)
    b2_2d = b2.reshape(1, C).astype(jnp.float32)

    out = pl.pallas_call(
        _se_kernel,
        out_shape=jax.ShapeDtypeStruct((N, C, HW), x_nchw.dtype),
        grid_spec=pltpu.PrefetchScalarGridSpec(
            num_scalar_prefetch=0,
            grid=(grid,),
            in_specs=[
                pl.BlockSpec((nb, C, HW), lambda g: (g, 0, 0)),   # x tile (Nb batch elems)
                pl.BlockSpec((C, mid), lambda g: (0, 0)),         # w1^T (constant)
                pl.BlockSpec((1, mid), lambda g: (0, 0)),         # b1   (constant)
                pl.BlockSpec((mid, C), lambda g: (0, 0)),         # w2^T (constant)
                pl.BlockSpec((1, C), lambda g: (0, 0)),           # b2   (constant)
            ],
            out_specs=pl.BlockSpec((nb, C, HW), lambda g: (g, 0, 0)),
        ),
        compiler_params=pltpu.CompilerParams(
            dimension_semantics=("parallel",),
            # v5e's scoped-VMEM default is only 16 MiB; raise it, but stay
            # below v7x's 64 MiB physical VMEM per TensorCore.
            vmem_limit_bytes=48 * 1024 * 1024,
        ),
    )(x_flat, w1t, b1_2d, w2t, b2_2d)

    return out.reshape(N, C, H, W)


def se_layer_ref(x, w1, b1, w2, b2):
    """Pure-JAX reference matching the PyTorch module."""
    pooled = jnp.mean(x, axis=(2, 3))                 # (N, C)
    h = jnp.maximum(pooled @ w1.T + b1, 0.0)          # (N, mid)
    s = jax.nn.sigmoid(h @ w2.T + b2)                 # (N, C)
    return x * s[:, :, None, None]


if __name__ == "__main__":
    # Small, module-consistent shapes: in_channels=64, reduction_ratio=16 -> mid=4.
    # N=4 so the wrapper picks Nb=2 (batched tiles) with a 2-step parallel grid.
    N, C, H, W = 4, 64, 8, 8
    reduction_ratio = 16
    mid = C // reduction_ratio

    key = jax.random.PRNGKey(0)
    kx, k1, k2, k3, k4 = jax.random.split(key, 5)

    x = jax.random.normal(kx, (N, C, H, W), dtype=jnp.float32)

    # Deterministic synthetic parameters (Conv2d 1x1 weights flattened to (out, in)).
    w1 = 0.1 * jax.random.normal(k1, (mid, C), dtype=jnp.float32)
    b1 = 0.1 * jax.random.normal(k2, (mid,), dtype=jnp.float32)
    w2 = 0.1 * jax.random.normal(k3, (C, mid), dtype=jnp.float32)
    b2 = 0.1 * jax.random.normal(k4, (C,), dtype=jnp.float32)

    out = jax.block_until_ready(se_layer(x, w1, b1, w2, b2))

    ref = se_layer_ref(x, w1, b1, w2, b2)
    assert out.shape == (N, C, H, W)
    assert jnp.allclose(out, ref, atol=1e-5, rtol=1e-5), "mismatch vs reference"

    print("KERNEL_OK")
</pallas_src>

<mosaic_0001>
module attributes {stable_mosaic.version = 11 : i64} {
  func.func @_se_kernel(%arg0: i32, %arg1: memref<2x64x64xf32, #tpu.memory_space<vmem>>, %arg2: memref<64x4xf32, #tpu.memory_space<vmem>>, %arg3: memref<1x4xf32, #tpu.memory_space<vmem>>, %arg4: memref<4x64xf32, #tpu.memory_space<vmem>>, %arg5: memref<1x64xf32, #tpu.memory_space<vmem>>, %arg6: memref<2x64x64xf32, #tpu.memory_space<vmem>>) attributes {dimension_semantics = [#tpu.dimension_semantics<parallel>], iteration_bounds = array<i64: 2>, scalar_prefetch = 0 : i64, scratch_operands = 0 : i64, tpu.core_type = #tpu.core_type<tc>, window_params = [{transform_indices = @transform_0, window_bounds = array<i64: 2, 64, 64>}, {pipeline_mode = #tpu.pipeline_mode<synchronous>, transform_indices = @transform_1, window_bounds = array<i64: 64, 4>}, {pipeline_mode = #tpu.pipeline_mode<synchronous>, transform_indices = @transform_2, window_bounds = array<i64: 1, 4>}, {pipeline_mode = #tpu.pipeline_mode<synchronous>, transform_indices = @transform_3, window_bounds = array<i64: 4, 64>}, {pipeline_mode = #tpu.pipeline_mode<synchronous>, transform_indices = @transform_4, window_bounds = array<i64: 1, 64>}, {transform_indices = @transform_5, window_bounds = array<i64: 2, 64, 64>}]} {
    %c0 = arith.constant 0 : index
    %c0_0 = arith.constant 0 : index
    %c0_1 = arith.constant 0 : index
    %0 = vector.load %arg1[%c0, %c0_0, %c0_1] : memref<2x64x64xf32, #tpu.memory_space<vmem>>, vector<2x64x64xf32>
    %cst = arith.constant dense<0.000000e+00> : vector<2x64xf32>
    %1 = vector.multi_reduction <add>, %0, %cst [2] : vector<2x64x64xf32> to vector<2x64xf32>
    %cst_2 = arith.constant 6.400000e+01 : f32
    %2 = vector.broadcast %cst_2 : f32 to vector<2x64xf32>
    %3 = arith.divf %1, %2 : vector<2x64xf32>
    %c0_3 = arith.constant 0 : index
    %c0_4 = arith.constant 0 : index
    %4 = vector.load %arg2[%c0_3, %c0_4] : memref<64x4xf32, #tpu.memory_space<vmem>>, vector<64x4xf32>
    %cst_5 = arith.constant dense<0.000000e+00> : vector<2x4xf32>
    %5 = tpu.matmul %3, %4, %cst_5 {dimension_numbers = #tpu.dot_dimension_numbers<[1], [0], [0], [1], [0, 0, 1, 1], [], []>} : vector<2x64xf32>, vector<64x4xf32>, vector<2x4xf32> -> vector<2x4xf32>
    %c0_6 = arith.constant 0 : index
    %c0_7 = arith.constant 0 : index
    %6 = vector.load %arg3[%c0_6, %c0_7] : memref<1x4xf32, #tpu.memory_space<vmem>>, vector<1x4xf32>
    %7 = vector.broadcast %6 : vector<1x4xf32> to vector<2x4xf32>
    %8 = arith.addf %5, %7 : vector<2x4xf32>
    %cst_8 = arith.constant 0.000000e+00 : f32
    %9 = vector.broadcast %cst_8 : f32 to vector<2x4xf32>
    %10 = arith.maximumf %8, %9 : vector<2x4xf32>
    %c0_9 = arith.constant 0 : index
    %c0_10 = arith.constant 0 : index
    %11 = vector.load %arg4[%c0_9, %c0_10] : memref<4x64xf32, #tpu.memory_space<vmem>>, vector<4x64xf32>
    %cst_11 = arith.constant dense<0.000000e+00> : vector<2x64xf32>
    %12 = tpu.matmul %10, %11, %cst_11 {dimension_numbers = #tpu.dot_dimension_numbers<[1], [0], [0], [1], [0, 0, 1, 1], [], []>} : vector<2x4xf32>, vector<4x64xf32>, vector<2x64xf32> -> vector<2x64xf32>
    %c0_12 = arith.constant 0 : index
    %c0_13 = arith.constant 0 : index
    %13 = vector.load %arg5[%c0_12, %c0_13] : memref<1x64xf32, #tpu.memory_space<vmem>>, vector<1x64xf32>
    %14 = vector.broadcast %13 : vector<1x64xf32> to vector<2x64xf32>
    %15 = arith.addf %12, %14 : vector<2x64xf32>
    %cst_14 = arith.constant 0.000000e+00 : f32
    %16 = vector.broadcast %cst_14 : f32 to vector<2x64xf32>
    %17 = arith.subf %16, %15 : vector<2x64xf32>
    %18 = math.exp %17 : vector<2x64xf32>
    %cst_15 = arith.constant 1.000000e+00 : f32
    %19 = vector.broadcast %cst_15 : f32 to vector<2x64xf32>
    %20 = arith.addf %19, %18 : vector<2x64xf32>
    %cst_16 = arith.constant 1.000000e+00 : f32
    %21 = vector.broadcast %cst_16 : f32 to vector<2x64xf32>
    %22 = arith.divf %21, %20 : vector<2x64xf32>
    %c0_17 = arith.constant 0 : index
    %c0_18 = arith.constant 0 : index
    %c0_19 = arith.constant 0 : index
    %23 = vector.load %arg1[%c0_17, %c0_18, %c0_19] : memref<2x64x64xf32, #tpu.memory_space<vmem>>, vector<2x64x64xf32>
    %24 = vector.shape_cast %22 : vector<2x64xf32> to vector<2x64x1xf32>
    %25 = vector.broadcast %24 : vector<2x64x1xf32> to vector<2x64x64xf32>
    %26 = arith.mulf %23, %25 : vector<2x64x64xf32>
    %c0_20 = arith.constant 0 : index
    %c0_21 = arith.constant 0 : index
    %c0_22 = arith.constant 0 : index
    %27 = vector.load %arg6[%c0_20, %c0_21, %c0_22] : memref<2x64x64xf32, #tpu.memory_space<vmem>>, vector<2x64x64xf32>
    tpu.vector_store %arg6[%c0_20, %c0_21, %c0_22], %26 {strides = array<i32>} : memref<2x64x64xf32, #tpu.memory_space<vmem>>, vector<2x64x64xf32>,
    return
  }
  func.func @transform_0(%arg0: i32) -> (i32, i32, i32) {
    %c0_i32 = arith.constant 0 : i32
    %c0_i32_0 = arith.constant 0 : i32
    %c0_i32_1 = arith.constant 0 : i32
    return %arg0, %c0_i32, %c0_i32_0 : i32, i32, i32
  }
  func.func @transform_1(%arg0: i32) -> (i32, i32) {
    %c0_i32 = arith.constant 0 : i32
    %c0_i32_0 = arith.constant 0 : i32
    %c0_i32_1 = arith.constant 0 : i32
    return %c0_i32, %c0_i32_0 : i32, i32
  }
  func.func @transform_2(%arg0: i32) -> (i32, i32) {
    %c0_i32 = arith.constant 0 : i32
    %c0_i32_0 = arith.constant 0 : i32
    %c0_i32_1 = arith.constant 0 : i32
    return %c0_i32, %c0_i32_0 : i32, i32
  }
  func.func @transform_3(%arg0: i32) -> (i32, i32) {
    %c0_i32 = arith.constant 0 : i32
    %c0_i32_0 = arith.constant 0 : i32
    %c0_i32_1 = arith.constant 0 : i32
    return %c0_i32, %c0_i32_0 : i32, i32
  }
  func.func @transform_4(%arg0: i32) -> (i32, i32) {
    %c0_i32 = arith.constant 0 : i32
    %c0_i32_0 = arith.constant 0 : i32
    %c0_i32_1 = arith.constant 0 : i32
    return %c0_i32, %c0_i32_0 : i32, i32
  }
  func.func @transform_5(%arg0: i32) -> (i32, i32, i32) {
    %c0_i32 = arith.constant 0 : i32
    %c0_i32_0 = arith.constant 0 : i32
    %c0_i32_1 = arith.constant 0 : i32
    return %arg0, %c0_i32, %c0_i32_0 : i32, i32, i32
  }
}

</mosaic_0001>

<bundles_post_ra>
// kernel: tpu_custom_call.1
= control target key start
LH: loop header
LB: loop body
LE: loop exit
PB: predicated region body
PF: predicated region fallthrough
CT: control target
= control target key end

     0   :  { %10 = vsyncpa [#allocation3], 0  ;;  %s1407_s0 = inlined_call_operand.hbm [shape: f32[4,64,64], index: 0, kind: input, shape index: {}]   ;;  %s1408_s1 = inlined_call_operand.vmem [shape: f32[64,4], index: 1, kind: input, shape index: {}]   ;;  %s1409_s2 = inlined_call_operand.vmem [shape: f32[1,4], index: 2, kind: input, shape index: {}]   ;;  %s1410_s3 = inlined_call_operand.vmem [shape: f32[4,64], index: 3, kind: input, shape index: {}]   ;;  %s1411_s4 = inlined_call_operand.vmem [shape: f32[1,64], index: 4, kind: input, shape index: {}]   ;;  %s1412_s5 = inlined_call_operand.hbm [shape: f32[4,64,64], index: 5, kind: output, shape index: {}]  }
   0x1   :  { %12 = vsyncpa [#allocation3 + $0x1], 0 }
   0x2   :  { %13 = vsyncpa [#allocation4], 0 }
   0x3   :  { %15 = vsyncpa [#allocation4 + $0x1], 0  ;;  %s1058_s18 = smov 0   ;;  %s1060_s19 = smov 0  }
   0x4   :  { %s1062_s20 = smov 0   ;;  %s1064_s21 = smov 0  }
   0x5 LB: > { %s1079_s22 = sadd.s32 4294967295, %s1018_s21   ;;  %s810_s23 = sadd.s32 4294967294, %s1018_s21   ;;  %s1018_s21 = sphi %s1064_s21, %s1427_s21   ;;  %s1014_s20 = sphi %s1062_s20, %s1426_s20   ;;  %s1010_s19 = sphi %s1060_s19, %s1425_s19   ;;  %s1006_s18 = sphi %s1058_s18, %s1424_s18  }
   0x6   : > { %s1083_s24 = sadd.s32 1, %s1018_s21   ;;  %s28_s25 = sadd.s32 1, %s1014_s20 }
   0x7   : > { %s25_s26 = ssub.s32 %s1018_s21, %s1083_s24  ;;  %p35_p0 = scmp.ne.s32.totalorder %s1014_s20, %s1010_s19 }
   0x8   : > { %p26_p1 = scmp.eq.s32.totalorder %s25_s26, 0  ;;  %p36_p2 = scmp.eq.s32.totalorder %s1018_s21, 0 }
   0x9   : > { %p41_p3 = scmp.ne.s32.totalorder %s1010_s19, %s1006_s18  ;;  %p42_p4 = scmp.eq.s32.totalorder %s1079_s22, 0 }
   0xa   : > { %s1095_s27 = scalar_select %p26_p1, %s1014_s20, %s28_s25  }
   0xb   : > { %p1097_p5 = por %p36_p2, %p35_p0  ;;  %p1101_p6 = por %p42_p4, %p41_p3 }
   0xc   : > { %p149_p7 = scmp.eq.s32.totalorder %s1079_s22, 1  ;;  %p155_p8 = scmp.eq.s32.totalorder %s810_s23, 1 }
   0xd   : > { %s1416_s29 = scalar_select %p1101_p6, 1, 0 }
   0xe   : > { %p882_p10 = scmp.lt.s32.totalorder %s1018_s21, 2  ;;  %p1108_p11 = por %p149_p7, %p35_p0 }
   0xf   : > { %p1112_p12 = por %p155_p8, %p41_p3  ;;  %s187_s7 = sand.u32 1, %s1014_s20  }
  0x10   : > { %s1417_s30 = scalar_select %p1108_p11, 1, 0 }
  0x11   : > { %s1418_s6 = scalar_select %p1112_p12, 1, 0 }
  0x12   : > { %s832_s8 = sshll.u32 %s1018_s21, 11  ;;  %s813_s9 = sshll.u32 %s187_s7, 7 }
  0x13   : > { %s1121_s12 = scalar_lea.hbm %s1407_s0, %s832_s8  ;;  %s191_s13 = scalar_lea.vmem [#allocation2], %s813_s9 }
  0x14   : > { %s199_s14 = sshll.u32 %s191_s13, 4  ;;  %p1125_p13 = pnand %p882_p10, %p1097_p5  ;;  %s1129_s14 = int_to_ptr.vmem [resolvable:$true] %s199_s14 }
  0x15   : > { %s1131_s16 = scalar_lea.sflag [#allocation3], %s187_s7  ;;  %s926_s17 = scalar_lea.hbm %s1121_s12, 2048 }
  0x16   : > { %p927_p0 = scmp.ne.s32.totalorder %s1121_s12, %s926_s17  ;;  %p928_p1 = pneg %p1125_p13 }
  0x17   : > { %s931_s26 = scalar_lea.hbm %s1407_s0, 4096  ;;  %p932_p4 = scmp.lt.s32.totalorder %s1121_s12, %s1407_s0 }
  0x18   : > { %p929_p2 = pnand %p928_p1, %p927_p0  ;;  %p933_p5 = scmp.lt.s32.totalorder %s931_s26, %s926_s17 }
  0x1a   : > { %p930_p3 = pneg %p929_p2  ;;  %p934_p7 = por %p933_p5, %p932_p4 }
  0x1c   : > { %p935_p8 = pnand %p934_p7, %p930_p3 }
  0x1e   : > { %938 = shalt.err (!%p935_p8)
}
  0x1f   : > { %s939_s7 = scalar_lea.vmem %s1129_s14, 2048  ;;  %s1020_s9 = smov [#allocation2]  }
  0x20   : > { %p940_p10 = scmp.ne.s32.totalorder %s1129_s14, %s939_s7  ;;  %s944_s10 = sshll.u32 %s1020_s9, 4  ;;  %s945_s10 = int_to_ptr.vmem [resolvable:$false] %s944_s10 }
  0x21   : > { %s946_s11 = scalar_lea.vmem %s945_s10, 4096  ;;  %p947_p2 = scmp.lt.s32.totalorder %s1129_s14, %s945_s10 }
  0x22   : > { %p942_p9 = pnand %p940_p10, %p928_p1  ;;  %p948_p12 = scmp.lt.s32.totalorder %s946_s11, %s939_s7 }
  0x24   : > { %p943_p0 = pneg %p942_p9  ;;  %p949_p11 = por %p948_p12, %p947_p2 }
  0x26   : > { %p950_p6 = pnand %p949_p11, %p943_p0 }
  0x28   : > { %953 = shalt.err (!%p950_p6)
}
  0x29   : > { %s1021_s13 = smov 128   ;;  %s1022_s17 = smov 8  }
  0x2a   : > { %877 = dma.hbm_to_vmem [thread:$0]  (!%p1125_p13), %s1121_s12, 2048, %s1129_s14, %s1131_s16, %s1021_s13, %s1021_s13, %s1022_s17  }
  0x2b   : > { %p817_p9 = scmp.ge.s32.totalorder %s1018_s21, 1  ;;  %p207_p1 = scmp.lt.s32.totalorder %s1018_s21, 3 }
  0x2d   : > { %p208_p3 = pnand %p817_p9, %p207_p1 }
  0x2e   : > { %s1155_s23 = sand.u32 (!%p208_p3), 1, %s1010_s19   ;;  %p1420_p6 = scmp.ne.s32.totalorder (!%p208_p3), %s1416_s29, 0 }
  0x2f   : > { %211 = sbr.rel (%p208_p3) target bundleno = 819 (0x333), region = 40  ;;  %s818_s25 = sshll.u32 (!%p208_p3), %s1155_s23, 7 }
  0x30   : > { %s214_s26 = scalar_lea.sflag (!%p208_p3), [#allocation3], %s1155_s23  ;;  %s1161_s28 = scalar_lea.vmem (!%p208_p3), [#allocation2], %s818_s25 }
  0x34   : > { %997 = dma.done.wait (%p1420_p6), %s214_s26, 2048  }
  0x35   : > { %999 = vsyncadd (%p1420_p6), %s214_s26, 4294965248  ;;  %vm262_vm0 = vcmask 523264   ;;  %v1168_v0 = vld [vmem:[%s1161_s28 + $0x40] sm:$0xff]  ;;  %v1174_v2 = vld [vmem:[%s1161_s28 + $0x48] sm:$0xff]  ;;  %v1023_v33 = vmov 0.0   ;;  %vm1024_vm1 = vmmov 0   ;;  %v359_v45 = vlaneseq }
  0x36   : > { %v1171_v1 = vld [vmem:[%s1161_s28] sm:$0xff]  ;;  %v287_v3 = vsel %vm262_vm0, %v1168_v0, 0.0  ;;  %v1181_v5 = vld [vmem:[%s1161_s28 + $0x8] sm:$0xff]  ;;  %v290_v6 = vsel %vm262_vm0, %v1174_v2, 0.0  ;;  %v1188_v8 = vld [vmem:[%s1161_s28 + $0x50] sm:$0xff]  ;;  %846 = vmatprep.subr.mxu0 %v1023_v33  ;;  %865 = vmatprep.subr.mxu1 %v1023_v33  ;;  %vm370_vm2 = vcmask 130112  }
  0x37   : > { %v263_v4 = vsel %vm262_vm0, %v1171_v1, 0.0  ;;  %288 = vadd.xlane.f32.xlu1 %v287_v3  ;;  %v266_v7 = vsel %vm262_vm0, %v1181_v5, 0.0  ;;  %v1191_v9 = vld [vmem:[%s1161_s28 + $0x10] sm:$0xff]  ;;  %v293_v10 = vsel %vm262_vm0, %v1188_v8, 0.0  ;;  %v1198_v12 = vld [vmem:[%s1161_s28 + $0x58] sm:$0xff]  ;;  %v1208_v16 = vld [vmem:[%s1161_s28 + $0x60] sm:$0xff]  ;;  %862 = vmatprep.mubr.msk.f32.mxu0 %vm1024_vm1, %v1023_v33 }
  0x38   : > { %264 = vadd.xlane.f32.xlu0 %v263_v4  ;;  %v269_v11 = vsel %vm262_vm0, %v1191_v9, 0.0  ;;  %v1201_v13 = vld [vmem:[%s1161_s28 + $0x18] sm:$0xff]  ;;  %v296_v14 = vsel %vm262_vm0, %v1198_v12, 0.0  ;;  %v1211_v17 = vld [vmem:[%s1161_s28 + $0x20] sm:$0xff]  ;;  %v299_v18 = vsel %vm262_vm0, %v1208_v16, 0.0  ;;  %v1218_v20 = vld [vmem:[%s1161_s28 + $0x68] sm:$0xff]  ;;  %867 = vmatprep.mubr.msk.f32.mxu1 %vm1024_vm1, %v1023_v33 }
  0x39   : > { %v272_v15 = vsel %vm262_vm0, %v1201_v13, 0.0  ;;  %v275_v19 = vsel %vm262_vm0, %v1211_v17, 0.0  ;;  %v1221_v21 = vld [vmem:[%s1161_s28 + $0x28] sm:$0xff]  ;;  %v302_v22 = vsel %vm262_vm0, %v1218_v20, 0.0  ;;  %v1228_v24 = vld [vmem:[%s1161_s28 + $0x70] sm:$0xff]  ;;  %v1238_v28 = vld [vmem:[%s1161_s28 + $0x78] sm:$0xff] }
  0x3a   : > { %v278_v23 = vsel %vm262_vm0, %v1221_v21, 0.0  ;;  %v1231_v25 = vld [vmem:[%s1161_s28 + $0x30] sm:$0xff]  ;;  %v305_v26 = vsel %vm262_vm0, %v1228_v24, 0.0  ;;  %v1241_v29 = vld [vmem:[%s1161_s28 + $0x38] sm:$0xff]  ;;  %v308_v30 = vsel %vm262_vm0, %v1238_v28, 0.0  ;;  %v333_v35 = vld [vmem:[%s1408_s1 + $0x28] sm:$0xff] }
  0x3b   : > { %291 = vadd.xlane.f32.xlu1 %v290_v6  ;;  %v281_v27 = vsel %vm262_vm0, %v1231_v25, 0.0  ;;  %v284_v31 = vsel %vm262_vm0, %v1241_v29, 0.0  ;;  %v335_v32 = vld [vmem:[%s1408_s1 + $0x38] sm:$0xff]  ;;  %v334_v34 = vld [vmem:[%s1408_s1 + $0x30] sm:$0xff]  ;;  %v332_v36 = vld [vmem:[%s1408_s1 + $0x20] sm:$0xff]  ;;  %v360_v48 = vand.u32 127, %v359_v45 }
  0x3c   : > { %267 = vadd.xlane.f32.xlu0 %v266_v7  ;;  %847 = vmatpush3.msra.mxu0 %v335_v32  ;;  %v331_v37 = vld [vmem:[%s1408_s1 + $0x18] sm:$0xff]  ;;  %v330_v38 = vld [vmem:[%s1408_s1 + $0x10] sm:$0xff]  ;;  %v329_v39 = vld [vmem:[%s1408_s1 + $0x8] sm:$0xff]  ;;  %v1271_v49 = vshrl.u32 %v359_v45, 7  ;;  %vm377_vm3 = vcmask 195712   ;;  %vm384_vm4 = vcmask 261312  }
  0x3d   : > { %848 = vmatprep.subr.mxu0 %v1023_v33  ;;  %v328_v40 = vld [vmem:[%s1408_s1] sm:$0xff]  ;;  %v365_v52 = vadd.s32 4294967288, %v360_v48  ;;  %v372_v53 = vadd.s32 4294967280, %v360_v48  ;;  %v379_v54 = vadd.s32 4294967272, %v360_v48  ;;  %v386_v55 = vadd.s32 4294967264, %v360_v48  ;;  %s1309_s10 = scalar_lea.vmem [#allocation5], %s818_s25 }
  0x3e   : > { %849 = vmatpush3.msra.mxu0 %v334_v34  ;;  %v363_v56 = vsub.s32 %v360_v48, %v1271_v49  ;;  %v393_v61 = vadd.s32 4294967256, %v360_v48  ;;  %v400_v63 = vadd.s32 4294967248, %v360_v48  ;;  %vm391_vm5 = vcmask 326912   ;;  %s834_s25 = sshll.u32 %s1079_s22, 11  ;;  %s737_s11 = sshll.u32 %s1309_s10, 4  ;;  %s1361_s11 = int_to_ptr.vmem [resolvable:$true] %s737_s11 }
  0x3f   : > { %294 = vadd.xlane.f32.xlu1 %v293_v10  ;;  %850 = vmatprep.subr.mxu0 %v1023_v33  ;;  %v368_v59 = vsub.s32 %v365_v52, %v1271_v49  ;;  %v375_v60 = vsub.s32 %v372_v53, %v1271_v49  ;;  %v382_v62 = vsub.s32 %v379_v54, %v1271_v49  ;;  %vm398_vm6 = vcmask 392512   ;;  %s1359_s26 = scalar_lea.hbm %s1412_s5, %s834_s25  ;;  %s723_s28 = scalar_lea.sflag [#allocation4], %s1155_s23 }
  0x40   : > { %270 = vadd.xlane.f32.xlu0 %v269_v11  ;;  %851 = vmatpush3.msra.mxu0 %v333_v35  ;;  %v389_v6 = vsub.s32 %v386_v55, %v1271_v49  ;;  %vm405_vm7 = vcmask 458112   ;;  %vm412_vm8 = vcmask 523712   ;;  %vm453_vm9 = vcmask 1041409   ;;  %s954_s22 = scalar_lea.vmem %s1361_s11, 2048  ;;  %p1421_p12 = scmp.ne.s32.totalorder %s1417_s30, 0 }
  0x41   : > { %852 = vmatprep.subr.mxu0 %v1023_v33  ;;  %vm540_vm10 = vcmask 1043456   ;;  %vm536_vm11 = vcmask 31744   ;;  %p955_p11 = scmp.ne.s32.totalorder %s1361_s11, %s954_s22  ;;  %s1025_s29 = smov [#allocation5]  }
  0x42   : > { %853 = vmatpush3.msra.mxu0 %v332_v36  ;;  %s958_s12 = sshll.u32 %s1025_s29, 4  ;;  %s959_s12 = int_to_ptr.vmem [resolvable:$false] %s958_s12 }
  0x43   : > { %297 = vadd.xlane.f32.xlu1 %v296_v14  ;;  %854 = vmatprep.subr.mxu0 %v1023_v33  ;;  %p956_p13 = pnand %p955_p11, %p1421_p12  ;;  %s960_s14 = scalar_lea.vmem %s959_s12, 4096 }
  0x44   : > { %273 = vadd.xlane.f32.xlu0 %v272_v15  ;;  %855 = vmatpush3.msra.mxu0 %v331_v37  ;;  %p961_p5 = scmp.lt.s32.totalorder %s1361_s11, %s959_s12  ;;  %p962_p7 = scmp.lt.s32.totalorder %s960_s14, %s954_s22 }
  0x45   : > { %856 = vmatprep.subr.mxu0 %v1023_v33  ;;  %p957_p4 = pneg %p956_p13 }
  0x46   : > { %857 = vmatpush3.msra.mxu0 %v330_v38  ;;  %p963_p8 = por %p962_p7, %p961_p5 }
  0x47   : > { %300 = vadd.xlane.f32.xlu1 %v299_v18  ;;  %858 = vmatprep.subr.mxu0 %v1023_v33 }
  0x48   : > { %276 = vadd.xlane.f32.xlu0 %v275_v19  ;;  %859 = vmatpush3.msra.mxu0 %v329_v39  ;;  %p964_p10 = pnand %p963_p8, %p957_p4 }
  0x49   : > { %860 = vmatprep.subr.mxu0 %v1023_v33 }
  0x4a   : > { %861 = vmatpush3.msra.mxu0 %v328_v40 }
  0x4b   : > { %303 = vadd.xlane.f32.xlu1 %v302_v22 }
  0x4c   : > { %279 = vadd.xlane.f32.xlu0 %v278_v23  ;;  %v396_v23 = vsub.s32 %v393_v61, %v1271_v49 }
  0x4f   : > { %306 = vadd.xlane.f32.xlu1 %v305_v26 }
  0x50   : > { %282 = vadd.xlane.f32.xlu0 %v281_v27 }
  0x53   : > { %309 = vadd.xlane.f32.xlu1 %v308_v30  ;;  %v403_v30 = vsub.s32 %v400_v63, %v1271_v49 }
  0x54   : > { %285 = vadd.xlane.f32.xlu0 %v284_v31  ;;  %v407_v31 = vadd.s32 4294967240, %v360_v48 }
  0xc0   : > { %v289_v41 = vpop.xlane.xlu1 %288 }
  0xc1   : > { %v265_v42 = vpop.xlane.xlu0 %264  ;;  %v320_v7 = vmul.f32 0.015625, %v289_v41 }
  0xc2   : > { %v312_v10 = vmul.f32 0.015625, %v265_v42 }
  0xc3   : > { %v417_v36 = vrot.slane %v320_v7, %v363_v56 }
  0xc4   : > { %v292_v43 = vpop.xlane.xlu1 %291  ;;  %v364_v37 = vrot.slane %v312_v10, %v363_v56 }
  0xc5   : > { %v268_v44 = vpop.xlane.xlu0 %267  ;;  %v321_v3 = vmul.f32 0.015625, %v292_v43 }
  0xc6   : > { %v313_v4 = vmul.f32 0.015625, %v268_v44 }
  0xc7   : > { %v421_v32 = vrot.slane %v321_v3, %v368_v59 }
  0xc8   : > { %v295_v46 = vpop.xlane.xlu1 %294  ;;  %v369_v33 = vrot.slane %v313_v4, %v368_v59 }
  0xc9   : > { %v271_v47 = vpop.xlane.xlu0 %270  ;;  %v322_v11 = vmul.f32 0.015625, %v295_v46  ;;  %v422_v48 = vsel %vm370_vm2, %v421_v32, %v417_v36 }
  0xca   : > { %v314_v14 = vmul.f32 0.015625, %v271_v47 }
  0xcb   : > { %v426_v38 = vrot.slane %v322_v11, %v375_v60 }
  0xcc   : > { %v298_v50 = vpop.xlane.xlu1 %297  ;;  %v376_v39 = vrot.slane %v314_v14, %v375_v60 }
  0xcd   : > { %v274_v51 = vpop.xlane.xlu0 %273  ;;  %v323_v19 = vmul.f32 0.015625, %v298_v50  ;;  %v410_v50 = vsub.s32 %v407_v31, %v1271_v49  ;;  %v427_v54 = vsel %vm377_vm3, %v426_v38, %v422_v48 }
  0xce   : > { %v315_v22 = vmul.f32 0.015625, %v274_v51  ;;  %v371_v51 = vsel %vm370_vm2, %v369_v33, %v364_v37  ;;  %v822_v33 = vld [vmem:[%s1411_s4] ss:$0 sm:$0xff] }
  0xcf   : > { %v431_v42 = vrot.slane %v323_v19, %v382_v62  ;;  %v378_v55 = vsel %vm377_vm3, %v376_v39, %v371_v51 }
  0xd0   : > { %v301_v57 = vpop.xlane.xlu1 %300  ;;  %v383_v43 = vrot.slane %v315_v22, %v382_v62 }
  0xd1   : > { %v277_v58 = vpop.xlane.xlu0 %276  ;;  %v324_v26 = vmul.f32 0.015625, %v301_v57  ;;  %v432_v60 = vsel %vm384_vm4, %v431_v42, %v427_v54 }
  0xd2   : > { %v316_v27 = vmul.f32 0.015625, %v277_v58  ;;  %v385_v61 = vsel %vm384_vm4, %v383_v43, %v378_v55 }
  0xd3   : > { %v436_v46 = vrot.slane %v324_v26, %v389_v6  ;;  %v820_v26 = vld [vmem:[%s1409_s2] ss:$0 sm:$0xff] }
  0xd4   : > { %v304_v15 = vpop.xlane.xlu1 %303  ;;  %v390_v47 = vrot.slane %v316_v27, %v389_v6 }
  0xd5   : > { %v280_v18 = vpop.xlane.xlu0 %279  ;;  %v325_v34 = vmul.f32 0.015625, %v304_v15  ;;  %v437_v3 = vsel %vm391_vm5, %v436_v46, %v432_v60 }
  0xd6   : > { %v317_v35 = vmul.f32 0.015625, %v280_v18  ;;  %v392_v4 = vsel %vm391_vm5, %v390_v47, %v385_v61 }
  0xd7   : > { %v441_v52 = vrot.slane %v325_v34, %v396_v23 }
  0xd8   : > { %v307_v40 = vpop.xlane.xlu1 %306  ;;  %v397_v53 = vrot.slane %v317_v35, %v396_v23  ;;  %v528_v23 = vld [vmem:[%s1410_s3] sm:$0xf] }
  0xd9   : > { %v283_v41 = vpop.xlane.xlu0 %282  ;;  %v326_v44 = vmul.f32 0.015625, %v307_v40  ;;  %v442_v6 = vsel %vm398_vm6, %v441_v52, %v437_v3  ;;  %866 = vmatpush3.msk.msra.mxu1 %vm540_vm10, %v528_v23 }
  0xda   : > { %v318_v45 = vmul.f32 0.015625, %v283_v41  ;;  %v399_v7 = vsel %vm398_vm6, %v397_v53, %v392_v4  ;;  %v622_v41 = vsub.s32 0, %v1271_v49 }
  0xdb   : > { %v446_v56 = vrot.slane %v326_v44, %v403_v30  ;;  %v657_v44 = vsub.s32 1, %v1271_v49 }
  0xdc   : > { %v404_v57 = vrot.slane %v318_v45, %v403_v30  ;;  %v310_v58 = vpop.xlane.xlu1 %309 }
  0xdd   : > { %v286_v59 = vpop.xlane.xlu0 %285  ;;  %v327_v62 = vmul.f32 0.015625, %v310_v58  ;;  %v447_v14 = vsel %vm405_vm7, %v446_v56, %v442_v6 }
  0xde   : > { %v319_v63 = vmul.f32 0.015625, %v286_v59  ;;  %v406_v15 = vsel %vm405_vm7, %v404_v57, %v399_v7 }
  0xdf   : > { %v451_v10 = vrot.slane %v327_v62, %v410_v50 }
  0xe0   : > { %v411_v11 = vrot.slane %v319_v63, %v410_v50 }
  0xe1   : > { %v452_v19 = vsel %vm412_vm8, %v451_v10, %v447_v14 }
  0xe2   : > { %v413_v18 = vsel %vm412_vm8, %v411_v11, %v406_v15 }
  0xe3   : > { %v454_v22 = vsel %vm453_vm9, %v452_v19, %v413_v18 }
  0xe4   : > { %863 = vmatmul.mubr.msk.f32.vlgmr.msra.gmra.mxu0 %vm262_vm0, %v454_v22 }
 0x1a4   : > { %v523_v27 = vpop.f32.mrf.mxu0 }
 0x1a5   : > { %v524_v30 = vadd.f32 %v820_v26, %v523_v27 }
 0x1a6   : > { %v864_v31 = vpop.f32.mrf.mxu0 }
 0x1a7   : > { %v527_v32 = vmax.f32 %v524_v30, 0.0 }
 0x1a9   : > { %868 = vmatmul.mubr.msk.f32.vlgmr.msra.gmra.mxu1 %vm536_vm11, %v527_v32 }
 0x269   : > { %v610_v34 = vpop.f32.mrf.mxu1 }
 0x26a   : > { %v611_v35 = vadd.f32 %v822_v33, %v610_v34 }
 0x26b   : > { %v869_v36 = vpop.f32.mrf.mxu1 }
 0x26c   : > { %v614_v37 = vsub.f32 0.0, %v611_v35 }
 0x26e   : > { %v615_v38 = vmul.f32 1.442695, %v614_v37 }
 0x270   : > { %922 = vpow2.f32 %v615_v38 }
 0x27d   : > { %v923_v39 = vpop.eup %922 }
 0x27e   : > { %v617_v40 = vadd.f32 1.0, %v923_v39 }
 0x280   : > { %924 = vrcp.f32 %v617_v40 }
 0x28d   : > { %v925_v42 = vpop.eup %924 }
 0x28e   : > { %v623_v43 = vrot.slane %v925_v42, %v622_v41  ;;  %v658_v45 = vrot.slane %v925_v42, %v657_v44 }
 0x290   : > { %629 = vbcast.lane.b32.xlu1 %v623_v43, 264  ;;  %625 = vbcast.lane.b32.xlu0 %v623_v43, 256 }
 0x294   : > { %633 = vbcast.lane.b32.xlu1 %v623_v43, 272  ;;  %641 = vbcast.lane.b32.xlu0 %v623_v43, 288 }
 0x298   : > { %637 = vbcast.lane.b32.xlu1 %v623_v43, 280  ;;  %649 = vbcast.lane.b32.xlu0 %v623_v43, 304 }
 0x29c   : > { %645 = vbcast.lane.b32.xlu1 %v623_v43, 296  ;;  %660 = vbcast.lane.b32.xlu0 %v658_v45, 256 }
 0x2a0   : > { %653 = vbcast.lane.b32.xlu1 %v623_v43, 312  ;;  %668 = vbcast.lane.b32.xlu0 %v658_v45, 272 }
 0x2a4   : > { %664 = vbcast.lane.b32.xlu1 %v658_v45, 264  ;;  %676 = vbcast.lane.b32.xlu0 %v658_v45, 288 }
 0x2a8   : > { %672 = vbcast.lane.b32.xlu1 %v658_v45, 280  ;;  %684 = vbcast.lane.b32.xlu0 %v658_v45, 304 }
 0x2ac   : > { %680 = vbcast.lane.b32.xlu1 %v658_v45, 296 }
 0x2b0   : > { %688 = vbcast.lane.b32.xlu1 %v658_v45, 312 }
 0x302   : > { %v630_v46 = vpop.permute.xlu1 %629  ;;  %v626_v47 = vpop.permute.xlu0 %625 }
 0x303   : > { %v691_v50 = vmul.f32 %v630_v46, %v1181_v5  ;;  %v690_v49 = vmul.f32 %v626_v47, %v1171_v1 }
 0x305   : > { %707 = vst.msk [vmem:[%s1309_s10 + $0x8] sm:$0xff] %vm262_vm0, %v691_v50  ;;  %706 = vst.msk [vmem:[%s1309_s10] sm:$0xff] %vm262_vm0, %v690_v49 }
 0x306   : > { %v634_v48 = vpop.permute.xlu1 %633  ;;  %v642_v51 = vpop.permute.xlu0 %641 }
 0x307   : > { %v692_v5 = vmul.f32 %v634_v48, %v1191_v9  ;;  %v694_v1 = vmul.f32 %v642_v51, %v1211_v17 }
 0x309   : > { %708 = vst.msk [vmem:[%s1309_s10 + $0x10] sm:$0xff] %vm262_vm0, %v692_v5  ;;  %710 = vst.msk [vmem:[%s1309_s10 + $0x20] sm:$0xff] %vm262_vm0, %v694_v1 }
 0x30a   : > { %v638_v52 = vpop.permute.xlu1 %637  ;;  %v650_v53 = vpop.permute.xlu0 %649 }
 0x30b   : > { %v693_v54 = vmul.f32 %v638_v52, %v1201_v13  ;;  %v696_v55 = vmul.f32 %v650_v53, %v1231_v25 }
 0x30d   : > { %709 = vst.msk [vmem:[%s1309_s10 + $0x18] sm:$0xff] %vm262_vm0, %v693_v54  ;;  %712 = vst.msk [vmem:[%s1309_s10 + $0x30] sm:$0xff] %vm262_vm0, %v696_v55 }
 0x30e   : > { %v646_v56 = vpop.permute.xlu1 %645  ;;  %v661_v9 = vpop.permute.xlu0 %660 }
 0x30f   : > { %v695_v17 = vmul.f32 %v646_v56, %v1221_v21  ;;  %v698_v57 = vmul.f32 %v661_v9, %v1168_v0 }
 0x311   : > { %711 = vst.msk [vmem:[%s1309_s10 + $0x28] sm:$0xff] %vm262_vm0, %v695_v17  ;;  %714 = vst.msk [vmem:[%s1309_s10 + $0x40] sm:$0xff] %vm262_vm0, %v698_v57 }
 0x312   : > { %v654_v58 = vpop.permute.xlu1 %653  ;;  %v669_v13 = vpop.permute.xlu0 %668 }
 0x313   : > { %v697_v25 = vmul.f32 %v654_v58, %v1241_v29  ;;  %v700_v59 = vmul.f32 %v669_v13, %v1188_v8 }
 0x315   : > { %713 = vst.msk [vmem:[%s1309_s10 + $0x38] sm:$0xff] %vm262_vm0, %v697_v25  ;;  %716 = vst.msk [vmem:[%s1309_s10 + $0x50] sm:$0xff] %vm262_vm0, %v700_v59 }
 0x316   : > { %v665_v21 = vpop.permute.xlu1 %664  ;;  %v677_v0 = vpop.permute.xlu0 %676 }
 0x317   : > { %v699_v60 = vmul.f32 %v665_v21, %v1174_v2  ;;  %v702_v61 = vmul.f32 %v677_v0, %v1208_v16 }
 0x319   : > { %715 = vst.msk [vmem:[%s1309_s10 + $0x48] sm:$0xff] %vm262_vm0, %v699_v60  ;;  %718 = vst.msk [vmem:[%s1309_s10 + $0x60] sm:$0xff] %vm262_vm0, %v702_v61 }
 0x31a   : > { %v673_v29 = vpop.permute.xlu1 %672  ;;  %v685_v8 = vpop.permute.xlu0 %684 }
 0x31b   : > { %v701_v62 = vmul.f32 %v673_v29, %v1198_v12  ;;  %v704_v63 = vmul.f32 %v685_v8, %v1228_v24 }
 0x31d   : > { %717 = vst.msk [vmem:[%s1309_s10 + $0x58] sm:$0xff] %vm262_vm0, %v701_v62  ;;  %720 = vst.msk [vmem:[%s1309_s10 + $0x70] sm:$0xff] %vm262_vm0, %v704_v63 }
 0x31e   : > { %v681_v2 = vpop.permute.xlu1 %680 }
 0x31f   : > { %v703_v16 = vmul.f32 %v681_v2, %v1218_v20 }
 0x321   : > { %719 = vst.msk [vmem:[%s1309_s10 + $0x68] sm:$0xff] %vm262_vm0, %v703_v16 }
 0x322   : > { %v689_v3 = vpop.permute.xlu1 %688 }
 0x323   : > { %v705_v12 = vmul.f32 %v689_v3, %v1238_v28 }
 0x325   : > { %721 = vst.msk [vmem:[%s1309_s10 + $0x78] sm:$0xff] %vm262_vm0, %v705_v12 }
 0x326   : > { %967 = shalt.err (!%p964_p10)
}
 0x327   : > { %s968_s15 = scalar_lea.hbm %s1359_s26, 2048  ;;  %s972_s7 = scalar_lea.hbm %s1412_s5, 4096 }
 0x328   : > { %p969_p0 = scmp.ne.s32.totalorder %s1359_s26, %s968_s15  ;;  %p973_p1 = scmp.lt.s32.totalorder %s1359_s26, %s1412_s5 }
 0x329   : > { %p974_p3 = scmp.lt.s32.totalorder %s972_s7, %s968_s15 }
 0x32a   : > { %p970_p2 = pnand %p969_p0, %p1421_p12 }
 0x32b   : > { %p975_p6 = por %p974_p3, %p973_p1 }
 0x32c   : > { %p971_p9 = pneg %p970_p2 }
 0x32e   : > { %p976_p11 = pnand %p975_p6, %p971_p9 }
 0x330   : > { %979 = shalt.err (!%p976_p11)
}
 0x331   : > { %s1026_s25 = smov 128   ;;  %s1027_s13 = smov 8  }
 0x332   : > { %872 = dma.vmem_to_hbm [thread:$0]  (%p1421_p12), %s1361_s11, 2048, %s1359_s26, %s723_s28, %s1026_s25, %s1026_s25, %s1027_s13  }
 0x333 PF: > { %s752_s17 = sand.u32 1, %s1006_s18   ;;  %p1422_p13 = scmp.ne.s32.totalorder %s1418_s6, 0 }
 0x334   : > { %p1423_p4 = scmp.ge.s32.totalorder %s1018_s21, 2  ;;  %s753_s22 = scalar_lea.sflag [#allocation4], %s752_s17 }
 0x336   : > { %p879_p5 = pnand %p1423_p4, %p1422_p13 }
 0x338   : > { %p880_p7 = pneg %p879_p5 }
 0x33a   : > { %1001 = dma.done.wait (%p880_p7), %s753_s22, 2048  }
 0x33b   : > { %1003 = vsyncadd (%p880_p7), %s753_s22, 4294965248  ;;  %p18_p8 = scmp.ge.s32.totalorder %s1083_s24, 4   ;;  %s1424_s18 = smov %s1010_s19 }
 0x33c   : > { %s1425_s19 = smov %s1014_s20  ;;  %s1426_s20 = smov %s1095_s27 }
 0x33d   : > { %s1427_s21 = smov %s1083_s24  ;;  %20 = sbr.rel (!%p18_p8) target bundleno = 5 (0x5), region = 85 }
 0x342   :  { %758 = vsyncpa [#allocation3], 1 }
 0x343   :  { %760 = vsyncpa [#allocation3 + $0x1], 1 }
 0x344   :  { %761 = vsyncpa [#allocation4], 1 }
 0x345   :  { %763 = vsyncpa [#allocation4 + $0x1], 1 }

</bundles_post_ra>
